<compile_context>
chip_gen: v5e
topology: v5e:2x2
jax: 0.10.0
libtpu: 0.0.40
codegen_flags: <defaults>
</compile_context>

<pallas_src>
import functools
import math

import jax
import jax.numpy as jnp
from jax.experimental import pallas as pl
from jax.experimental.pallas import tpu as pltpu


# ---------------------------------------------------------------------------
# Pallas kernel: fused chain  h_{l+1} = act_l(h_l @ W_l + b_l)
# ---------------------------------------------------------------------------
def fused_chain_kernel(x_ref, *refs, acts, emit_after):
    """refs = (w_0, b_0, ..., w_{n-1}, b_{n-1}, out_refs...).

    acts: static tuple of "sigmoid"/"tanh"/"none", one per layer.
    emit_after: if not None, additionally store the activation produced after
    layer `emit_after` into the first output ref (used by the pretrain path).
    """
    n = len(acts)
    param_refs = refs[: 2 * n]
    out_refs = refs[2 * n:]

    h = x_ref[...]                                # (tile_b, dim_in) f32
    for li in range(n):                           # unrolled at trace time
        w = param_refs[2 * li][...]               # (dim_in, dim_out) bf16
        b = param_refs[2 * li + 1][...]           # (1, dim_out) f32
        y = jnp.dot(h.astype(w.dtype), w,
                    preferred_element_type=jnp.float32) + b
        act = acts[li]
        if act == "sigmoid":
            y = jax.nn.sigmoid(y)                 # f32 epilogue (EUP)
        elif act == "tanh":
            y = jnp.tanh(y)
        elif act == "none":
            pass
        else:
            raise ValueError(f"unknown act {act}")
        h = y                                     # stays VMEM/vreg resident
        if emit_after is not None and li == emit_after:
            out_refs[0][...] = h.astype(out_refs[0].dtype)

    out_refs[-1][...] = h.astype(out_refs[-1].dtype)


# ---------------------------------------------------------------------------
# Wrapper: one pallas_call for a whole layer chain
# ---------------------------------------------------------------------------
_MAX_TILE_B = 512  # rows per batch tile (fp32); plenty of VMEM headroom on v7x too


def _batch_tiling(B):
    """Pad B to a multiple of 8 and pick a single large batch tile."""
    Bp8 = ((B + 7) // 8) * 8
    if Bp8 <= _MAX_TILE_B:
        return Bp8, Bp8                          # one grid step
    tile = _MAX_TILE_B
    Bp = pl.cdiv(Bp8, tile) * tile
    return Bp, tile


def fused_chain(x, layers, acts, emit_after=None):
    """act_n(... act_0(x @ W_0 + b_0) ...) in one fused Pallas kernel.

    layers: list of (w_bf16 [di, do], b_f32 [1, do]).
    If emit_after is an int, also return the activation after that layer.
    """
    B, dim_in = x.shape
    n = len(layers)
    assert n == len(acts)

    Bp, tile_b = _batch_tiling(B)
    x = x.astype(jnp.float32)
    if Bp != B:
        x = jnp.pad(x, ((0, Bp - B), (0, 0)))    # single pad per forward

    in_specs = [pl.BlockSpec((tile_b, dim_in), lambda i: (i, 0))]
    operands = [x]
    for (w, b) in layers:
        di, do = w.shape
        in_specs.append(pl.BlockSpec((di, do), lambda i: (0, 0)))   # resident
        in_specs.append(pl.BlockSpec((1, do), lambda i: (0, 0)))    # resident
        operands += [w, b]

    out_dim_final = layers[-1][0].shape[1]
    if emit_after is None:
        out_shape = jax.ShapeDtypeStruct((Bp, out_dim_final), jnp.float32)
        out_specs = pl.BlockSpec((tile_b, out_dim_final), lambda i: (i, 0))
    else:
        out_dim_mid = layers[emit_after][0].shape[1]
        out_shape = (jax.ShapeDtypeStruct((Bp, out_dim_mid), jnp.float32),
                     jax.ShapeDtypeStruct((Bp, out_dim_final), jnp.float32))
        out_specs = [pl.BlockSpec((tile_b, out_dim_mid), lambda i: (i, 0)),
                     pl.BlockSpec((tile_b, out_dim_final), lambda i: (i, 0))]

    result = pl.pallas_call(
        functools.partial(fused_chain_kernel, acts=tuple(acts),
                          emit_after=emit_after),
        out_shape=out_shape,
        grid_spec=pltpu.PrefetchScalarGridSpec(
            num_scalar_prefetch=0,
            grid=(Bp // tile_b,),
            in_specs=in_specs,
            out_specs=out_specs,
        ),
        compiler_params=pltpu.CompilerParams(
            dimension_semantics=("parallel",)),   # megacore-shardable batch axis
    )(*operands)

    if emit_after is None:
        return result[:B]
    mid, fin = result
    return mid[:B], fin[:B]


# ---------------------------------------------------------------------------
# Parameter container mirroring the PyTorch module
# ---------------------------------------------------------------------------
def _init_linear(key, fan_in, fan_out):
    """Mimics nn.Linear's U(-1/sqrt(fan_in), 1/sqrt(fan_in)) init."""
    kw, kb = jax.random.split(key)
    bound = 1.0 / math.sqrt(fan_in)
    w = jax.random.uniform(kw, (fan_in, fan_out), jnp.float32, -bound, bound)
    b = jax.random.uniform(kb, (fan_out,), jnp.float32, -bound, bound)
    return w, b


class StackedAutoEncoderPallas:
    def __init__(self, size, key):
        self.size = list(size)
        self.AElength = len(size)
        self.SAE = []
        keys = jax.random.split(key, self.AElength)
        for i in range(1, self.AElength):
            ke, kd = jax.random.split(keys[i - 1])
            enc_w, enc_b = _init_linear(ke, size[i - 1], size[i])
            dec_w, dec_b = _init_linear(kd, size[i], size[i - 1])
            self.SAE.append(dict(
                enc_w=enc_w, enc_b=enc_b.reshape(1, -1),
                dec_w=dec_w, dec_b=dec_b.reshape(1, -1),
                # pre-cast once at init: MXU-native bf16 inputs, no per-call astype
                enc_w_bf=enc_w.astype(jnp.bfloat16),
                dec_w_bf=dec_w.astype(jnp.bfloat16)))
        pw, pb = _init_linear(keys[-1], size[-1], 1)
        self.proj_w, self.proj_b = pw, pb.reshape(1, -1)
        self.proj_w_bf = pw.astype(jnp.bfloat16)

    # --- StackedAutoEncoder.forward ---
    def forward(self, X, NoL=0, PreTrain=False):
        # TODO(synk): requires_grad toggling in the PyTorch forward is a
        # training-time concern with no inference/Pallas equivalent.
        X = X.astype(jnp.float32)
        if PreTrain is True:
            if NoL == 0:
                p = self.SAE[0]
                rec = fused_chain(
                    X,
                    layers=[(p["enc_w_bf"], p["enc_b"]),
                            (p["dec_w_bf"], p["dec_b"])],
                    acts=("sigmoid", "sigmoid"))
                return (X, rec)
            else:
                # encoder prefix (reps) + full auto-encoder NoL, fused in one call;
                # the prefix output ("inputs") is emitted as a second kernel output.
                layers, acts = [], []
                for i in range(NoL):
                    p = self.SAE[i]
                    layers.append((p["enc_w_bf"], p["enc_b"]))
                    acts.append("sigmoid")
                p = self.SAE[NoL]   # IndexError for NoL == AElength-1, as in PyTorch
                layers += [(p["enc_w_bf"], p["enc_b"]),
                           (p["dec_w_bf"], p["dec_b"])]
                acts += ["sigmoid", "sigmoid"]
                inputs, out = fused_chain(X, layers, tuple(acts),
                                          emit_after=NoL - 1)
                return (inputs, out)
        else:
            # main path: all encoder sigmoids + tanh projection, ONE pallas_call
            layers, acts = [], []
            for p in self.SAE:
                layers.append((p["enc_w_bf"], p["enc_b"]))
                acts.append("sigmoid")
            layers.append((self.proj_w_bf, self.proj_b))
            acts.append("tanh")
            return fused_chain(X, layers, tuple(acts))


# ---------------------------------------------------------------------------
# Pure-JAX references (f32 weights) for sanity checks
# ---------------------------------------------------------------------------
def _ref_forward(model, X):
    out = X
    for p in model.SAE:
        out = jax.nn.sigmoid(out @ p["enc_w"] + p["enc_b"])
    return jnp.tanh(out @ model.proj_w + model.proj_b)


def _ref_pretrain(model, X, NoL):
    out = X
    for i in range(NoL):
        p = model.SAE[i]
        out = jax.nn.sigmoid(out @ p["enc_w"] + p["enc_b"])
    inputs = out
    p = model.SAE[NoL]
    h = jax.nn.sigmoid(inputs @ p["enc_w"] + p["enc_b"])
    rec = jax.nn.sigmoid(h @ p["dec_w"] + p["dec_b"])
    return inputs, rec


if __name__ == "__main__":
    key = jax.random.PRNGKey(0)
    k_param, k_x = jax.random.split(key)

    # size list: input features 16 -> hidden 32 -> hidden 8 ; batch = 20
    size = [16, 32, 8]
    B = 20  # deliberately not a multiple of 8 to exercise the padding path
    model = StackedAutoEncoderPallas(size, k_param)

    X = jax.random.normal(k_x, (B, size[0]), dtype=jnp.float32)

    # Main forward path (PreTrain=False): fused sigmoid encoders + tanh proj.
    out = model.forward(X, NoL=0, PreTrain=False)
    out = jax.block_until_ready(out)
    assert out.shape == (B, 1), out.shape

    # Pretrain path, layer 1: returns (hidden-rep input, its reconstruction).
    inp1, rec1 = model.forward(X, NoL=1, PreTrain=True)
    jax.block_until_ready(rec1)
    assert inp1.shape == (B, size[1]) and rec1.shape == (B, size[1])

    # Pretrain path, layer 0: returns (X, reconstruction of X).
    inp0, rec0 = model.forward(X, NoL=0, PreTrain=True)
    jax.block_until_ready(rec0)
    assert inp0.shape == (B, size[0]) and rec0.shape == (B, size[0])

    # Numerical checks vs f32 references (bf16 matmul -> relaxed tolerance).
    ref = _ref_forward(model, X)
    assert jnp.allclose(out, ref, atol=3e-2, rtol=3e-2), (out, ref)

    ref_inp1, ref_rec1 = _ref_pretrain(model, X, 1)
    assert jnp.allclose(inp1, ref_inp1, atol=3e-2, rtol=3e-2)
    assert jnp.allclose(rec1, ref_rec1, atol=3e-2, rtol=3e-2)

    print("KERNEL_OK")
</pallas_src>

<mosaic_0001>
module attributes {stable_mosaic.version = 11 : i64} {
  func.func @fused_chain_kernel(%arg0: i32, %arg1: memref<24x16xf32, #tpu.memory_space<vmem>>, %arg2: memref<16x32xbf16, #tpu.memory_space<vmem>>, %arg3: memref<1x32xf32, #tpu.memory_space<vmem>>, %arg4: memref<32x8xbf16, #tpu.memory_space<vmem>>, %arg5: memref<1x8xf32, #tpu.memory_space<vmem>>, %arg6: memref<8x1xbf16, #tpu.memory_space<vmem>>, %arg7: memref<1x1xf32, #tpu.memory_space<vmem>>, %arg8: memref<24x1xf32, #tpu.memory_space<vmem>>) attributes {dimension_semantics = [#tpu.dimension_semantics<parallel>], iteration_bounds = array<i64: 1>, scalar_prefetch = 0 : i64, scratch_operands = 0 : i64, tpu.core_type = #tpu.core_type<tc>, window_params = [{transform_indices = @transform_0, window_bounds = array<i64: 24, 16>}, {pipeline_mode = #tpu.pipeline_mode<synchronous>, transform_indices = @transform_1, window_bounds = array<i64: 16, 32>}, {pipeline_mode = #tpu.pipeline_mode<synchronous>, transform_indices = @transform_2, window_bounds = array<i64: 1, 32>}, {pipeline_mode = #tpu.pipeline_mode<synchronous>, transform_indices = @transform_3, window_bounds = array<i64: 32, 8>}, {pipeline_mode = #tpu.pipeline_mode<synchronous>, transform_indices = @transform_4, window_bounds = array<i64: 1, 8>}, {pipeline_mode = #tpu.pipeline_mode<synchronous>, transform_indices = @transform_5, window_bounds = array<i64: 8, 1>}, {pipeline_mode = #tpu.pipeline_mode<synchronous>, transform_indices = @transform_6, window_bounds = array<i64: 1, 1>}, {transform_indices = @transform_7, window_bounds = array<i64: 24, 1>}]} {
    %c0 = arith.constant 0 : index
    %c0_0 = arith.constant 0 : index
    %0 = vector.load %arg1[%c0, %c0_0] : memref<24x16xf32, #tpu.memory_space<vmem>>, vector<24x16xf32>
    %c0_1 = arith.constant 0 : index
    %c0_2 = arith.constant 0 : index
    %1 = vector.load %arg2[%c0_1, %c0_2] : memref<16x32xbf16, #tpu.memory_space<vmem>>, vector<16x32xbf16>
    %c0_3 = arith.constant 0 : index
    %c0_4 = arith.constant 0 : index
    %2 = vector.load %arg3[%c0_3, %c0_4] : memref<1x32xf32, #tpu.memory_space<vmem>>, vector<1x32xf32>
    %3 = arith.truncf %0 : vector<24x16xf32> to vector<24x16xbf16>
    %cst = arith.constant dense<0.000000e+00> : vector<24x32xf32>
    %4 = tpu.matmul %3, %1, %cst {dimension_numbers = #tpu.dot_dimension_numbers<[1], [0], [0], [1], [0, 0, 1, 1], [], []>} : vector<24x16xbf16>, vector<16x32xbf16>, vector<24x32xf32> -> vector<24x32xf32>
    %5 = vector.broadcast %2 : vector<1x32xf32> to vector<24x32xf32>
    %6 = arith.addf %4, %5 : vector<24x32xf32>
    %7 = arith.negf %6 : vector<24x32xf32>
    %8 = math.exp %7 : vector<24x32xf32>
    %cst_5 = arith.constant 1.000000e+00 : f32
    %9 = vector.broadcast %cst_5 : f32 to vector<24x32xf32>
    %10 = arith.addf %9, %8 : vector<24x32xf32>
    %11 = arith.divf %9, %10 : vector<24x32xf32>
    %c0_6 = arith.constant 0 : index
    %c0_7 = arith.constant 0 : index
    %12 = vector.load %arg4[%c0_6, %c0_7] : memref<32x8xbf16, #tpu.memory_space<vmem>>, vector<32x8xbf16>
    %c0_8 = arith.constant 0 : index
    %c0_9 = arith.constant 0 : index
    %13 = vector.load %arg5[%c0_8, %c0_9] : memref<1x8xf32, #tpu.memory_space<vmem>>, vector<1x8xf32>
    %14 = arith.truncf %11 : vector<24x32xf32> to vector<24x32xbf16>
    %cst_10 = arith.constant dense<0.000000e+00> : vector<24x8xf32>
    %15 = tpu.matmul %14, %12, %cst_10 {dimension_numbers = #tpu.dot_dimension_numbers<[1], [0], [0], [1], [0, 0, 1, 1], [], []>} : vector<24x32xbf16>, vector<32x8xbf16>, vector<24x8xf32> -> vector<24x8xf32>
    %16 = vector.broadcast %13 : vector<1x8xf32> to vector<24x8xf32>
    %17 = arith.addf %15, %16 : vector<24x8xf32>
    %18 = arith.negf %17 : vector<24x8xf32>
    %19 = math.exp %18 : vector<24x8xf32>
    %cst_11 = arith.constant 1.000000e+00 : f32
    %20 = vector.broadcast %cst_11 : f32 to vector<24x8xf32>
    %21 = arith.addf %20, %19 : vector<24x8xf32>
    %22 = arith.divf %20, %21 : vector<24x8xf32>
    %c0_12 = arith.constant 0 : index
    %c0_13 = arith.constant 0 : index
    %23 = vector.load %arg6[%c0_12, %c0_13] : memref<8x1xbf16, #tpu.memory_space<vmem>>, vector<8x1xbf16>
    %c0_14 = arith.constant 0 : index
    %c0_15 = arith.constant 0 : index
    %24 = vector.load %arg7[%c0_14, %c0_15] : memref<1x1xf32, #tpu.memory_space<vmem>>, vector<1x1xf32>
    %25 = arith.truncf %22 : vector<24x8xf32> to vector<24x8xbf16>
    %cst_16 = arith.constant dense<0.000000e+00> : vector<24x1xf32>
    %26 = tpu.matmul %25, %23, %cst_16 {dimension_numbers = #tpu.dot_dimension_numbers<[1], [0], [0], [1], [0, 0, 1, 1], [], []>} : vector<24x8xbf16>, vector<8x1xbf16>, vector<24x1xf32> -> vector<24x1xf32>
    %27 = vector.broadcast %24 : vector<1x1xf32> to vector<24x1xf32>
    %28 = arith.addf %26, %27 : vector<24x1xf32>
    %29 = math.tanh %28 : vector<24x1xf32>
    %c0_17 = arith.constant 0 : index
    %c0_18 = arith.constant 0 : index
    %30 = vector.load %arg8[%c0_17, %c0_18] : memref<24x1xf32, #tpu.memory_space<vmem>>, vector<24x1xf32>
    tpu.vector_store %arg8[%c0_17, %c0_18], %29 {strides = array<i32>} : memref<24x1xf32, #tpu.memory_space<vmem>>, vector<24x1xf32>,
    return
  }
  func.func @transform_0(%arg0: i32) -> (i32, i32) {
    %c0_i32 = arith.constant 0 : i32
    %c0_i32_0 = arith.constant 0 : i32
    return %arg0, %c0_i32 : i32, i32
  }
  func.func @transform_1(%arg0: i32) -> (i32, i32) {
    %c0_i32 = arith.constant 0 : i32
    %c0_i32_0 = arith.constant 0 : i32
    %c0_i32_1 = arith.constant 0 : i32
    return %c0_i32, %c0_i32_0 : i32, i32
  }
  func.func @transform_2(%arg0: i32) -> (i32, i32) {
    %c0_i32 = arith.constant 0 : i32
    %c0_i32_0 = arith.constant 0 : i32
    %c0_i32_1 = arith.constant 0 : i32
    return %c0_i32, %c0_i32_0 : i32, i32
  }
  func.func @transform_3(%arg0: i32) -> (i32, i32) {
    %c0_i32 = arith.constant 0 : i32
    %c0_i32_0 = arith.constant 0 : i32
    %c0_i32_1 = arith.constant 0 : i32
    return %c0_i32, %c0_i32_0 : i32, i32
  }
  func.func @transform_4(%arg0: i32) -> (i32, i32) {
    %c0_i32 = arith.constant 0 : i32
    %c0_i32_0 = arith.constant 0 : i32
    %c0_i32_1 = arith.constant 0 : i32
    return %c0_i32, %c0_i32_0 : i32, i32
  }
  func.func @transform_5(%arg0: i32) -> (i32, i32) {
    %c0_i32 = arith.constant 0 : i32
    %c0_i32_0 = arith.constant 0 : i32
    %c0_i32_1 = arith.constant 0 : i32
    return %c0_i32, %c0_i32_0 : i32, i32
  }
  func.func @transform_6(%arg0: i32) -> (i32, i32) {
    %c0_i32 = arith.constant 0 : i32
    %c0_i32_0 = arith.constant 0 : i32
    %c0_i32_1 = arith.constant 0 : i32
    return %c0_i32, %c0_i32_0 : i32, i32
  }
  func.func @transform_7(%arg0: i32) -> (i32, i32) {
    %c0_i32 = arith.constant 0 : i32
    %c0_i32_0 = arith.constant 0 : i32
    return %arg0, %c0_i32 : i32, i32
  }
}

</mosaic_0001>

<bundles_post_ra>
// kernel: tpu_custom_call.1
= control target key start
LH: loop header
LB: loop body
LE: loop exit
PB: predicated region body
PF: predicated region fallthrough
CT: control target
= control target key end

     0   :  { %vm46_vm0 = vcmask 130048   ;;  %vm150_vm9 = vcmask 261120   ;;  %vm246_vm14 = vcmask 1043456   ;;  %s422_s1 = inlined_call_operand.vmem [shape: bf16[16,32], index: 1, kind: input, shape index: {}]   ;;  %s423_s0 = inlined_call_operand.vmem [shape: f32[24,16], index: 0, kind: input, shape index: {}]   ;;  %s424_s2 = inlined_call_operand.vmem [shape: f32[1,32], index: 2, kind: input, shape index: {}]   ;;  %s425_s4 = inlined_call_operand.vmem [shape: f32[1,8], index: 4, kind: input, shape index: {}]   ;;  %s426_s3 = inlined_call_operand.vmem [shape: bf16[32,8], index: 3, kind: input, shape index: {}]   ;;  %s427_s5 = inlined_call_operand.vmem [shape: bf16[8,1], index: 5, kind: input, shape index: {}]   ;;  %s428_s6 = inlined_call_operand.<no memory space> [shape: f32[1,1], index: 6, kind: input, shape index: {}]   ;;  %s429_s7 = inlined_call_operand.vmem [shape: f32[24,1], index: 7, kind: output, shape index: {}]  }
   0x1   :  { %v303_v0 = vld [vmem:[%s422_s1] sm:$0xff]  ;;  %v30_v2 = vld [vmem:[%s423_s0 + $0x8] sm:$0xff]  ;;  %v31_v4 = vld [vmem:[%s423_s0 + $0x10] sm:$0xff] }
   0x2   :  { %v29_v1 = vld [vmem:[%s423_s0] sm:$0xff]  ;;  %60 = vmatpush.bf16.msra.mxu0 %v303_v0  ;;  %v36_v5 = vpack.c.bf16 %v31_v4, %v31_v4  ;;  %v305_v7 = vld [vmem:[%s426_s3 + $0x8] sm:$0xff] }
   0x3   :  { %v35_v3 = vpack.c.bf16 %v30_v2, %v29_v1  ;;  %v308_v6 = vld [vmem:[%s424_s2] ss:$0 sm:$0xff]  ;;  %163 = vmatpush.bf16.msra.mxu1 %v305_v7  ;;  %306 = vmatpush.bf16.msra.mxu3 %v305_v7 }
   0x4   :  { %v304_v9 = vld [vmem:[%s426_s3] sm:$0xff] }
   0x5   :  { %283 = vmatmul.msk.bf16.vlgmr.msra.gmra.mxu0 %vm46_vm0, %v35_v3  ;;  %v309_v57 = vld [vmem:[%s425_s4] ss:$0 sm:$0xff] }
   0x6   :  { %v232_v58 = vld [vmem:[%s427_s5] sm:$0xf] }
   0x7   :  { %164 = vmatpush.bf16.msra.mxu1 %v304_v9  ;;  %307 = vmatpush.bf16.msra.mxu3 %v304_v9  ;;  %v248_v59 = vsel %vm246_vm14, %v232_v58, 0 }
   0x8   :  { %257 = vmatpush.bf16.msra.mxu2 %v248_v59 }
  0x15   :  { %284 = vmatmul.msk.bf16.gmra.mxu0 %vm46_vm0, %v36_v5 }
  0x82   :  { %v62_v8 = vpop.f32.mrf.mxu0 }
  0x83   :  { %v63_v10 = vadd.f32 %v308_v6, %v62_v8 }
  0x85   :  { %v285_v11 = vmul.f32 -1.442695, %v63_v10 }
  0x87   :  { %311 = vpow2.f32 %v285_v11 }
  0x8a   :  { %v64_v12 = vpop.f32.mrf.mxu0 }
  0x8b   :  { %v65_v13 = vadd.f32 %v308_v6, %v64_v12 }
  0x8d   :  { %v312_v14 = vpop.eup %311  ;;  %v286_v15 = vmul.f32 -1.442695, %v65_v13 }
  0x8e   :  { %v80_v16 = vadd.f32 1.0, %v312_v14  ;;  %v12_v14 = vstv %s428_s6 }
  0x8f   :  { %313 = vpow2.f32 %v286_v15  ;;  %13 = vst [vmem:[#allocation2] sm:$0x1] %v12_v14 }
  0x90   :  { %315 = vrcp.f32 %v80_v16  ;;  %vm88_vm2 = vweird.f32 %v80_v16  ;;  %v94_v33 = vand.u32 2147483648, %v80_v16  ;;  %v92_v35 = vand.u32 2147483647, %v80_v16 }
  0x92   :  { %v67_v17 = vpop.f32.mrf.mxu0  ;;  %v95_v41 = vor.u32 1.1754944e-38, %v94_v33  ;;  %vm93_vm7 = vcmp.eq.f32.partialorder %v92_v35, 8.507059e+37 }
  0x93   :  { %v68_v18 = vadd.f32 %v308_v6, %v67_v17 }
  0x95   :  { %v314_v19 = vpop.eup %313  ;;  %v287_v20 = vmul.f32 -1.442695, %v68_v18 }
  0x96   :  { %v316_v21 = vpop.eup %315  ;;  %v81_v22 = vadd.f32 1.0, %v314_v19 }
  0x97   :  { %v84_v23 = vmul.f32 %v316_v21, %v80_v16  ;;  %317 = vpow2.f32 %v287_v20  ;;  %vm89_vm1 = vweird.f32 %v316_v21 }
  0x98   :  { %319 = vrcp.f32 %v81_v22  ;;  %v109_v34 = vand.u32 2147483648, %v81_v22  ;;  %v107_v37 = vand.u32 2147483647, %v81_v22  ;;  %vm90_vm4 = vmor %vm88_vm2, %vm89_vm1  ;;  %vm103_vm5 = vweird.f32 %v81_v22 }
  0x99   :  { %v85_v24 = vsub.f32 1.0, %v84_v23 }
  0x9a   :  { %v69_v25 = vpop.f32.mrf.mxu0  ;;  %v110_v42 = vor.u32 1.1754944e-38, %v109_v34  ;;  %vm108_vm8 = vcmp.eq.f32.partialorder %v107_v37, 8.507059e+37 }
  0x9b   :  { %v86_v27 = vmul.f32 %v316_v21, %v85_v24 }
  0x9d   :  { %v318_v26 = vpop.eup %317  ;;  %v87_v31 = vadd.f32 %v316_v21, %v86_v27 }
  0x9e   :  { %v320_v28 = vpop.eup %319  ;;  %v82_v29 = vadd.f32 1.0, %v318_v26 }
  0x9f   :  { %v99_v30 = vmul.f32 %v320_v28, %v81_v22  ;;  %vm104_vm3 = vweird.f32 %v320_v28  ;;  %v91_v38 = vsel %vm90_vm4, %v316_v21, %v87_v31 }
  0xa0   :  { %321 = vrcp.f32 %v82_v29  ;;  %vm105_vm6 = vmor %vm103_vm5, %vm104_vm3  ;;  %v96_v45 = vsel %vm93_vm7, %v95_v41, %v91_v38  ;;  %v124_v49 = vand.u32 2147483648, %v82_v29  ;;  %vm118_vm10 = vweird.f32 %v82_v29 }
  0xa1   :  { %v100_v32 = vsub.f32 1.0, %v99_v30  ;;  %v122_v51 = vand.u32 2147483647, %v82_v29  ;;  %vm239_vm7 = vcmask 64512  }
  0xa2   :  { %v125_v53 = vor.u32 1.1754944e-38, %v124_v49 }
  0xa3   :  { %v101_v36 = vmul.f32 %v320_v28, %v100_v32  ;;  %vm123_vm13 = vcmp.eq.f32.partialorder %v122_v51, 8.507059e+37 }
  0xa5   :  { %v102_v39 = vadd.f32 %v320_v28, %v101_v36 }
  0xa6   :  { %v322_v40 = vpop.eup %321 }
  0xa7   :  { %v106_v43 = vsel %vm105_vm6, %v320_v28, %v102_v39  ;;  %v114_v44 = vmul.f32 %v322_v40, %v82_v29  ;;  %vm119_vm11 = vweird.f32 %v322_v40 }
  0xa8   :  { %v111_v46 = vsel %vm108_vm8, %v110_v42, %v106_v43  ;;  %vm120_vm12 = vmor %vm118_vm10, %vm119_vm11 }
  0xa9   :  { %v133_v47 = vpack.c.bf16 %v111_v46, %v96_v45  ;;  %v115_v48 = vsub.f32 1.0, %v114_v44  ;;  %v310_v45 = vld [vmem:[#allocation2] ss:$0 sm:$0xff] }
  0xab   :  { %296 = vmatmul.msk.bf16.vlgmr.msra.gmra.mxu1 %vm150_vm9, %v133_v47  ;;  %v116_v50 = vmul.f32 %v322_v40, %v115_v48 }
  0xad   :  { %v117_v52 = vadd.f32 %v322_v40, %v116_v50 }
  0xaf   :  { %v121_v54 = vsel %vm120_vm12, %v322_v40, %v117_v52  ;;  %vm271_vm12 = vcmask 7168  }
  0xb0   :  { %v126_v55 = vsel %vm123_vm13, %v125_v53, %v121_v54 }
  0xb1   :  { %v134_v56 = vpack.c.bf16 %v126_v55, %v126_v55 }
  0xb3   :  { %297 = vmatmul.msk.bf16.vlgmr.msra.gmra.mxu3 %vm150_vm9, %v134_v56 }
 0x128   :  { %v166_v60 = vpop.f32.mrf.mxu1 }
 0x129   :  { %v167_v61 = vadd.f32 %v309_v57, %v166_v60 }
 0x12b   :  { %v298_v62 = vmul.f32 -1.442695, %v167_v61 }
 0x12d   :  { %323 = vpow2.f32 %v298_v62 }
 0x130   :  { %v168_v63 = vpop.f32.mrf.mxu1 }
 0x131   :  { %v169_v0 = vadd.f32 %v309_v57, %v168_v63 }
 0x133   :  { %v324_v1 = vpop.eup %323  ;;  %v299_v2 = vmul.f32 -1.442695, %v169_v0 }
 0x134   :  { %v184_v3 = vadd.f32 1.0, %v324_v1 }
 0x135   :  { %325 = vpow2.f32 %v299_v2 }
 0x136   :  { %327 = vrcp.f32 %v184_v3  ;;  %v171_v4 = vpop.f32.mrf.mxu3  ;;  %vm192_vm0 = vweird.f32 %v184_v3  ;;  %v198_v21 = vand.u32 2147483648, %v184_v3  ;;  %v196_v23 = vand.u32 2147483647, %v184_v3 }
 0x137   :  { %v172_v5 = vadd.f32 %v309_v57, %v171_v4 }
 0x138   :  { %v199_v30 = vor.u32 1.1754944e-38, %v198_v21  ;;  %vm197_vm5 = vcmp.eq.f32.partialorder %v196_v23, 8.507059e+37 }
 0x139   :  { %v300_v6 = vmul.f32 -1.442695, %v172_v5 }
 0x13b   :  { %v326_v7 = vpop.eup %325  ;;  %329 = vpow2.f32 %v300_v6 }
 0x13c   :  { %v328_v8 = vpop.eup %327  ;;  %v185_v9 = vadd.f32 1.0, %v326_v7 }
 0x13d   :  { %v188_v10 = vmul.f32 %v328_v8, %v184_v3  ;;  %vm193_vm15 = vweird.f32 %v328_v8 }
 0x13e   :  { %331 = vrcp.f32 %v185_v9  ;;  %v173_v11 = vpop.f32.mrf.mxu3  ;;  %v213_v22 = vand.u32 2147483648, %v185_v9  ;;  %v211_v25 = vand.u32 2147483647, %v185_v9  ;;  %vm194_vm2 = vmor %vm192_vm0, %vm193_vm15  ;;  %vm207_vm3 = vweird.f32 %v185_v9 }
 0x13f   :  { %v189_v12 = vsub.f32 1.0, %v188_v10 }
 0x140   :  { %v214_v31 = vor.u32 1.1754944e-38, %v213_v22  ;;  %vm212_vm6 = vcmp.eq.f32.partialorder %v211_v25, 8.507059e+37 }
 0x141   :  { %v330_v13 = vpop.eup %329  ;;  %v190_v16 = vmul.f32 %v328_v8, %v189_v12 }
 0x142   :  { %v186_v15 = vadd.f32 1.0, %v330_v13 }
 0x143   :  { %v191_v19 = vadd.f32 %v328_v8, %v190_v16 }
 0x144   :  { %v332_v17 = vpop.eup %331  ;;  %333 = vrcp.f32 %v186_v15  ;;  %v228_v39 = vand.u32 2147483648, %v186_v15  ;;  %vm222_vm9 = vweird.f32 %v186_v15  ;;  %v226_v40 = vand.u32 2147483647, %v186_v15 }
 0x145   :  { %v203_v18 = vmul.f32 %v332_v17, %v185_v9  ;;  %vm208_vm1 = vweird.f32 %v332_v17  ;;  %v195_v27 = vsel %vm194_vm2, %v328_v8, %v191_v19 }
 0x146   :  { %vm209_vm4 = vmor %vm207_vm3, %vm208_vm1  ;;  %v200_v34 = vsel %vm197_vm5, %v199_v30, %v195_v27  ;;  %v229_v42 = vor.u32 1.1754944e-38, %v228_v39  ;;  %vm227_vm11 = vcmp.eq.f32.partialorder %v226_v40, 8.507059e+37 }
 0x147   :  { %v204_v20 = vsub.f32 1.0, %v203_v18 }
 0x149   :  { %v205_v24 = vmul.f32 %v332_v17, %v204_v20 }
 0x14a   :  { %v334_v26 = vpop.eup %333 }
 0x14b   :  { %v206_v28 = vadd.f32 %v332_v17, %v205_v24  ;;  %v218_v29 = vmul.f32 %v334_v26, %v186_v15  ;;  %vm223_vm8 = vweird.f32 %v334_v26 }
 0x14c   :  { %vm224_vm10 = vmor %vm222_vm9, %vm223_vm8 }
 0x14d   :  { %v210_v32 = vsel %vm209_vm4, %v332_v17, %v206_v28  ;;  %v219_v33 = vsub.f32 1.0, %v218_v29 }
 0x14e   :  { %v215_v35 = vsel %vm212_vm6, %v214_v31, %v210_v32 }
 0x14f   :  { %v234_v36 = vpack.c.bf16 %v215_v35, %v200_v34  ;;  %v220_v37 = vmul.f32 %v334_v26, %v219_v33 }
 0x151   :  { %301 = vmatmul.msk.bf16.vlgmr.msra.gmra.mxu2 %vm239_vm7, %v234_v36  ;;  %v221_v38 = vadd.f32 %v334_v26, %v220_v37 }
 0x153   :  { %v225_v41 = vsel %vm224_vm10, %v334_v26, %v221_v38 }
 0x154   :  { %v230_v43 = vsel %vm227_vm11, %v229_v42, %v225_v41 }
 0x155   :  { %v235_v44 = vpack.c.bf16 %v230_v43, %v230_v43 }
 0x161   :  { %302 = vmatmul.msk.bf16.gmra.mxu2 %vm239_vm7, %v235_v44 }
 0x1d4   :  { %v259_v46 = vpop.f32.mrf.mxu2 }
 0x1d5   :  { %v260_v47 = vadd.f32 %v310_v45, %v259_v46 }
 0x1d7   :  { %335 = vtanh.f32 %v260_v47 }
 0x1dc   :  { %v261_v48 = vpop.f32.mrf.mxu2 }
 0x1dd   :  { %v336_v49 = vpop.eup %335  ;;  %v262_v50 = vadd.f32 %v310_v45, %v261_v48 }
 0x1de   :  { %272 = vst.msk [vmem:[%s429_s7] sm:$0xff] %vm271_vm12, %v336_v49 }
 0x1df   :  { %337 = vtanh.f32 %v262_v50 }
 0x1e4   :  { %v264_v51 = vpop.f32.mrf.mxu2 }
 0x1e5   :  { %v338_v52 = vpop.eup %337  ;;  %v265_v53 = vadd.f32 %v310_v45, %v264_v51 }
 0x1e6   :  { %273 = vst.msk [vmem:[%s429_s7 + $0x8] sm:$0xff] %vm271_vm12, %v338_v52 }
 0x1e7   :  { %339 = vtanh.f32 %v265_v53 }
 0x1ec   :  { %v266_v54 = vpop.f32.mrf.mxu2 }
 0x1ed   :  { %v340_v55 = vpop.eup %339 }
 0x1ee   :  { %274 = vst.msk [vmem:[%s429_s7 + $0x10] sm:$0xff] %vm271_vm12, %v340_v55 }

</bundles_post_ra>
